<compile_context>
chip_gen: v7x
topology: tpu7x:2x2x1
jax: 0.10.0
libtpu: 0.0.40
codegen_flags: <defaults>
</compile_context>

<pallas_src>
import functools

import jax
import jax.numpy as jnp
from jax.experimental import pallas as pl
from jax.experimental.pallas import tpu as pltpu


def _make_fused_kernel(nb, H, W, c_in, c_mid, c_out):
    """Fused conv1 -> ReLU -> conv2 for `nb` images per grid step, lane-dense (rows, W*C)."""

    def _pad_rows(a):
        # One row of zero halo above/below each image, built at value level
        # (stays in vregs; no scratch zero-fill / masked store / reload).
        z = jnp.zeros((nb, 1, a.shape[-1]), a.dtype)
        return jnp.concatenate([z, a, z], axis=1)              # (nb, H+2, lanes)

    def kernel(x_ref, w1_ref, b1_ref, w2_ref, b2_ref, feat1_ref, feat2_ref):
        # ---- conv1: 3 kh taps; kw is folded into dense banded weights -> 3 MXU matmuls
        xp = _pad_rows(x_ref[...])                             # (nb, H+2, W*c_in) f32
        acc1 = jnp.zeros((nb * H, W * c_mid), jnp.float32)
        for kh in range(3):                                    # short static loop (unrolled)
            tap = xp[:, kh:kh + H, :].reshape(nb * H, W * c_in)
            acc1 = acc1 + jnp.dot(tap, w1_ref[kh],
                                  preferred_element_type=jnp.float32)
        conv1 = acc1 + b1_ref[...]                             # (nb*H, W*c_mid)
        feat1_ref[...] = conv1.reshape(nb, H, W * c_mid).astype(feat1_ref.dtype)

        # ---- ReLU stays in vregs; conv2 consumes it directly (never touches HBM).
        #      conv2's own ReLU is unused downstream -> not computed.
        ap = _pad_rows(jnp.maximum(conv1, 0.0).reshape(nb, H, W * c_mid))
        acc2 = jnp.zeros((nb * H, W * c_out), jnp.float32)
        for kh in range(3):
            tap = ap[:, kh:kh + H, :].reshape(nb * H, W * c_mid)
            acc2 = acc2 + jnp.dot(tap, w2_ref[kh],
                                  preferred_element_type=jnp.float32)
        feat2_ref[...] = (acc2 + b2_ref[...]).reshape(nb, H, W * c_out).astype(feat2_ref.dtype)

    return kernel


def _fused_backbone(x2d, w1b, b1t, w2b, b2t, nb, H, W, c_in, c_mid, c_out):
    """x2d: (N, H, W*c_in) f32; wXb: (3, W*Cin, W*Cout) banded f32; bXt: (1, W*Cout) f32."""
    N = x2d.shape[0]
    kernel = _make_fused_kernel(nb, H, W, c_in, c_mid, c_out)
    feat1, feat2 = pl.pallas_call(
        kernel,
        out_shape=(
            jax.ShapeDtypeStruct((N, H, W * c_mid), jnp.float32),
            jax.ShapeDtypeStruct((N, H, W * c_out), jnp.float32),
        ),
        grid_spec=pltpu.PrefetchScalarGridSpec(
            num_scalar_prefetch=0,
            grid=(N // nb,),
            in_specs=[
                pl.BlockSpec((nb, H, W * c_in), lambda n: (n, 0, 0)),
                # Constant index_maps -> weights/biases DMA'd once, reused across steps.
                pl.BlockSpec((3, W * c_in, W * c_mid), lambda n: (0, 0, 0)),
                pl.BlockSpec((1, W * c_mid), lambda n: (0, 0)),
                pl.BlockSpec((3, W * c_mid, W * c_out), lambda n: (0, 0, 0)),
                pl.BlockSpec((1, W * c_out), lambda n: (0, 0)),
            ],
            out_specs=[
                pl.BlockSpec((nb, H, W * c_mid), lambda n: (n, 0, 0)),
                pl.BlockSpec((nb, H, W * c_out), lambda n: (n, 0, 0)),
            ],
        ),
        compiler_params=pltpu.CompilerParams(dimension_semantics=("parallel",)),
    )(x2d, w1b, b1t, w2b, b2t)
    return feat1, feat2


def _banded_weights(w, width):
    """(3,3,Cin,Cout) -> (3, width*Cin, width*Cout): fold kw into a dense band per kh.

    Row (p*Cin + ci), column (w*Cout + co) holds w[kh, kw, ci, co] with p = w + kw - 1;
    out-of-range edge taps are simply absent (== SAME zero padding along W), so no
    lane padding of the activations is ever needed.  ~3x smaller than the old
    block-diagonal trick, 3 matmuls per conv instead of 9, no lane-unaligned slices.
    """
    KH, KW, Ci, Co = w.shape
    shift = jnp.stack([jnp.eye(width, width, k=1 - kw, dtype=w.dtype)
                       for kw in range(KW)])                   # (KW, width, width)
    band = jnp.einsum("kpw,hkio->hpiwo", shift, w)             # (KH, width, Ci, width, Co)
    return band.reshape(KH, width * Ci, width * Co)


def _pick_nb(N, H, target_rows=256):
    """Images per grid step.  M = nb*H rows per matmul (target ~256 for v6e/v7x MXU),
    but keep >= 2 grid steps when N >= 2 so both v7x TensorCores get work."""
    if N <= 1:
        return 1
    cap = max(1, min(N // 2, max(1, target_rows // H)))
    for nb in range(cap, 0, -1):
        if N % nb == 0:
            return nb
    return 1


def init_params(key, c_in=4, c_mid=8, c_out=16):
    """Deterministic parameter init. Weights kept in (KH, KW, Cin, Cout) layout."""
    k1, k2, k3, k4 = jax.random.split(key, 4)
    return {
        "conv1_w": jax.random.normal(k1, (3, 3, c_in, c_mid), jnp.float32) * 0.1,
        "conv1_b": jax.random.normal(k2, (1, c_mid), jnp.float32) * 0.1,
        "conv2_w": jax.random.normal(k3, (3, 3, c_mid, c_out), jnp.float32) * 0.1,
        "conv2_b": jax.random.normal(k4, (1, c_out), jnp.float32) * 0.1,
    }


@functools.partial(jax.jit, static_argnames=("target_layers", "layout"))
def feature_extractor_forward(x_nchw, params, target_layers=("conv1", "conv2"),
                              layout="NCHW"):
    """Equivalent of FeatureExtractor.forward: run the model, return hooked features.

    x_nchw: (N, C, H, W) as in PyTorch.  layout="NCHW" matches PyTorch hook outputs;
    layout="NHWC" skips the wrapper-side repack transposes (lane-dense features).
    """
    N, c_in, H, W = x_nchw.shape
    c_mid = params["conv1_w"].shape[-1]
    c_out = params["conv2_w"].shape[-1]

    # NCHW -> lane-dense (N, H, W*Cin): channels fastest along the lane axis.
    x2d = jnp.transpose(x_nchw, (0, 2, 3, 1)).reshape(N, H, W * c_in)

    w1b = _banded_weights(params["conv1_w"], W)     # (3, W*Cin, W*Cmid) f32
    w2b = _banded_weights(params["conv2_w"], W)     # (3, W*Cmid, W*Cout) f32
    b1t = jnp.tile(params["conv1_b"], (1, W))       # (1, W*Cmid) f32
    b2t = jnp.tile(params["conv2_b"], (1, W))       # (1, W*Cout) f32

    nb = _pick_nb(N, H)
    feat1, feat2 = _fused_backbone(x2d, w1b, b1t, w2b, b2t,
                                   nb, H, W, c_in, c_mid, c_out)

    def repack(f, c):
        if layout == "NHWC":      # no extra HBM round trip for downstream consumers
            return f.reshape(N, H, W, c)
        return jnp.transpose(f.reshape(N, H, W, c), (0, 3, 1, 2))   # PyTorch NCHW

    features = {}
    if "conv1" in target_layers:
        features["conv1"] = repack(feat1, c_mid)
    if "conv2" in target_layers:
        features["conv2"] = repack(feat2, c_out)

    # TODO(synk): forward hooks on arbitrary named_modules of an arbitrary wrapped
    # model have no static Pallas equivalent; this implements the concrete synthetic backbone.
    return features


def _reference_conv(x_nhwc, w, b):
    out = jax.lax.conv_general_dilated(
        x_nhwc, w, window_strides=(1, 1), padding="SAME",
        dimension_numbers=("NHWC", "HWIO", "NHWC"),
    )
    return out + b[0]


if __name__ == "__main__":
    key = jax.random.PRNGKey(0)
    kx, kp = jax.random.split(key)

    N, C, H, W = 2, 4, 16, 16
    x = jax.random.normal(kx, (N, C, H, W), jnp.float32)
    params = init_params(kp, c_in=C, c_mid=8, c_out=16)

    feats = feature_extractor_forward(x, params)
    jax.block_until_ready(feats)

    # Cross-check against XLA's conv.  Operands stay f32 in the Pallas kernel
    # (no deliberate bf16 quantization of the hooked activations); tolerance
    # only covers MXU pass / summation-order differences.
    x_nhwc = jnp.transpose(x, (0, 2, 3, 1))
    ref1 = _reference_conv(x_nhwc, params["conv1_w"], params["conv1_b"])
    ref2 = _reference_conv(jnp.maximum(ref1, 0.0), params["conv2_w"], params["conv2_b"])
    ref = {
        "conv1": jnp.transpose(ref1, (0, 3, 1, 2)),
        "conv2": jnp.transpose(ref2, (0, 3, 1, 2)),
    }
    for name in ("conv1", "conv2"):
        assert feats[name].shape == ref[name].shape, (name, feats[name].shape)
        err = float(jnp.max(jnp.abs(feats[name] - ref[name])))
        assert err < 2e-2, f"{name} mismatch: {err}"

    print("KERNEL_OK")
</pallas_src>

<mosaic_0001>
module attributes {stable_mosaic.version = 11 : i64} {
  func.func @kernel(%arg0: i32, %arg1: memref<1x16x64xf32, #tpu.memory_space<vmem>>, %arg2: memref<3x64x128xf32, #tpu.memory_space<vmem>>, %arg3: memref<1x128xf32, #tpu.memory_space<vmem>>, %arg4: memref<3x128x256xf32, #tpu.memory_space<vmem>>, %arg5: memref<1x256xf32, #tpu.memory_space<vmem>>, %arg6: memref<1x16x128xf32, #tpu.memory_space<vmem>>, %arg7: memref<1x16x256xf32, #tpu.memory_space<vmem>>) attributes {dimension_semantics = [#tpu.dimension_semantics<parallel>], iteration_bounds = array<i64: 2>, scalar_prefetch = 0 : i64, scratch_operands = 0 : i64, tpu.core_type = #tpu.core_type<tc>, window_params = [{transform_indices = @transform_0, window_bounds = array<i64: 1, 16, 64>}, {pipeline_mode = #tpu.pipeline_mode<synchronous>, transform_indices = @transform_1, window_bounds = array<i64: 3, 64, 128>}, {pipeline_mode = #tpu.pipeline_mode<synchronous>, transform_indices = @transform_2, window_bounds = array<i64: 1, 128>}, {pipeline_mode = #tpu.pipeline_mode<synchronous>, transform_indices = @transform_3, window_bounds = array<i64: 3, 128, 256>}, {pipeline_mode = #tpu.pipeline_mode<synchronous>, transform_indices = @transform_4, window_bounds = array<i64: 1, 256>}, {transform_indices = @transform_5, window_bounds = array<i64: 1, 16, 128>}, {transform_indices = @transform_6, window_bounds = array<i64: 1, 16, 256>}]} {
    %c0 = arith.constant 0 : index
    %c0_0 = arith.constant 0 : index
    %c0_1 = arith.constant 0 : index
    %0 = vector.load %arg1[%c0, %c0_0, %c0_1] : memref<1x16x64xf32, #tpu.memory_space<vmem>>, vector<1x16x64xf32>
    %cst = arith.constant 0.000000e+00 : f32
    %1 = vector.broadcast %cst : f32 to vector<1x1x64xf32>
    %2 = tpu.concatenate %1, %0, %1 in 1 : vector<1x1x64xf32>, vector<1x16x64xf32>, vector<1x1x64xf32> -> vector<1x18x64xf32>
    %cst_2 = arith.constant 0.000000e+00 : f32
    %3 = vector.broadcast %cst_2 : f32 to vector<16x128xf32>
    %4 = vector.extract_strided_slice %2 {offsets = [0, 0, 0], sizes = [1, 16, 64], strides = [1, 1, 1]} : vector<1x18x64xf32> to vector<1x16x64xf32>
    %5 = vector.shape_cast %4 : vector<1x16x64xf32> to vector<16x64xf32>
    %c0_3 = arith.constant 0 : index
    %c0_4 = arith.constant 0 : index
    %c0_5 = arith.constant 0 : index
    %6 = vector.load %arg2[%c0_3, %c0_4, %c0_5] : memref<3x64x128xf32, #tpu.memory_space<vmem>>, vector<1x64x128xf32>
    %7 = vector.shape_cast %6 : vector<1x64x128xf32> to vector<64x128xf32>
    %cst_6 = arith.constant dense<0.000000e+00> : vector<16x128xf32>
    %8 = tpu.matmul %5, %7, %cst_6 {dimension_numbers = #tpu.dot_dimension_numbers<[1], [0], [0], [1], [0, 0, 1, 1], [], []>} : vector<16x64xf32>, vector<64x128xf32>, vector<16x128xf32> -> vector<16x128xf32>
    %9 = arith.addf %3, %8 : vector<16x128xf32>
    %10 = vector.extract_strided_slice %2 {offsets = [0, 1, 0], sizes = [1, 16, 64], strides = [1, 1, 1]} : vector<1x18x64xf32> to vector<1x16x64xf32>
    %11 = vector.shape_cast %10 : vector<1x16x64xf32> to vector<16x64xf32>
    %c1 = arith.constant 1 : index
    %c0_7 = arith.constant 0 : index
    %c0_8 = arith.constant 0 : index
    %12 = vector.load %arg2[%c1, %c0_7, %c0_8] : memref<3x64x128xf32, #tpu.memory_space<vmem>>, vector<1x64x128xf32>
    %13 = vector.shape_cast %12 : vector<1x64x128xf32> to vector<64x128xf32>
    %cst_9 = arith.constant dense<0.000000e+00> : vector<16x128xf32>
    %14 = tpu.matmul %11, %13, %cst_9 {dimension_numbers = #tpu.dot_dimension_numbers<[1], [0], [0], [1], [0, 0, 1, 1], [], []>} : vector<16x64xf32>, vector<64x128xf32>, vector<16x128xf32> -> vector<16x128xf32>
    %15 = arith.addf %9, %14 : vector<16x128xf32>
    %16 = vector.extract_strided_slice %2 {offsets = [0, 2, 0], sizes = [1, 16, 64], strides = [1, 1, 1]} : vector<1x18x64xf32> to vector<1x16x64xf32>
    %17 = vector.shape_cast %16 : vector<1x16x64xf32> to vector<16x64xf32>
    %c2 = arith.constant 2 : index
    %c0_10 = arith.constant 0 : index
    %c0_11 = arith.constant 0 : index
    %18 = vector.load %arg2[%c2, %c0_10, %c0_11] : memref<3x64x128xf32, #tpu.memory_space<vmem>>, vector<1x64x128xf32>
    %19 = vector.shape_cast %18 : vector<1x64x128xf32> to vector<64x128xf32>
    %cst_12 = arith.constant dense<0.000000e+00> : vector<16x128xf32>
    %20 = tpu.matmul %17, %19, %cst_12 {dimension_numbers = #tpu.dot_dimension_numbers<[1], [0], [0], [1], [0, 0, 1, 1], [], []>} : vector<16x64xf32>, vector<64x128xf32>, vector<16x128xf32> -> vector<16x128xf32>
    %21 = arith.addf %15, %20 : vector<16x128xf32>
    %c0_13 = arith.constant 0 : index
    %c0_14 = arith.constant 0 : index
    %22 = vector.load %arg3[%c0_13, %c0_14] : memref<1x128xf32, #tpu.memory_space<vmem>>, vector<1x128xf32>
    %23 = vector.broadcast %22 : vector<1x128xf32> to vector<16x128xf32>
    %24 = arith.addf %21, %23 : vector<16x128xf32>
    %25 = vector.shape_cast %24 : vector<16x128xf32> to vector<1x16x128xf32>
    %c0_15 = arith.constant 0 : index
    %c0_16 = arith.constant 0 : index
    %c0_17 = arith.constant 0 : index
    %26 = vector.load %arg6[%c0_15, %c0_16, %c0_17] : memref<1x16x128xf32, #tpu.memory_space<vmem>>, vector<1x16x128xf32>
    tpu.vector_store %arg6[%c0_15, %c0_16, %c0_17], %25 {strides = array<i32>} : memref<1x16x128xf32, #tpu.memory_space<vmem>>, vector<1x16x128xf32>,
    %cst_18 = arith.constant 0.000000e+00 : f32
    %27 = vector.broadcast %cst_18 : f32 to vector<16x128xf32>
    %28 = arith.maximumf %24, %27 : vector<16x128xf32>
    %29 = vector.shape_cast %28 : vector<16x128xf32> to vector<1x16x128xf32>
    %cst_19 = arith.constant 0.000000e+00 : f32
    %30 = vector.broadcast %cst_19 : f32 to vector<1x1x128xf32>
    %31 = tpu.concatenate %30, %29, %30 in 1 : vector<1x1x128xf32>, vector<1x16x128xf32>, vector<1x1x128xf32> -> vector<1x18x128xf32>
    %cst_20 = arith.constant 0.000000e+00 : f32
    %32 = vector.broadcast %cst_20 : f32 to vector<16x256xf32>
    %33 = vector.extract_strided_slice %31 {offsets = [0, 0, 0], sizes = [1, 16, 128], strides = [1, 1, 1]} : vector<1x18x128xf32> to vector<1x16x128xf32>
    %34 = vector.shape_cast %33 : vector<1x16x128xf32> to vector<16x128xf32>
    %c0_21 = arith.constant 0 : index
    %c0_22 = arith.constant 0 : index
    %c0_23 = arith.constant 0 : index
    %35 = vector.load %arg4[%c0_21, %c0_22, %c0_23] : memref<3x128x256xf32, #tpu.memory_space<vmem>>, vector<1x128x256xf32>
    %36 = vector.shape_cast %35 : vector<1x128x256xf32> to vector<128x256xf32>
    %cst_24 = arith.constant dense<0.000000e+00> : vector<16x256xf32>
    %37 = tpu.matmul %34, %36, %cst_24 {dimension_numbers = #tpu.dot_dimension_numbers<[1], [0], [0], [1], [0, 0, 1, 1], [], []>} : vector<16x128xf32>, vector<128x256xf32>, vector<16x256xf32> -> vector<16x256xf32>
    %38 = arith.addf %32, %37 : vector<16x256xf32>
    %39 = vector.extract_strided_slice %31 {offsets = [0, 1, 0], sizes = [1, 16, 128], strides = [1, 1, 1]} : vector<1x18x128xf32> to vector<1x16x128xf32>
    %40 = vector.shape_cast %39 : vector<1x16x128xf32> to vector<16x128xf32>
    %c1_25 = arith.constant 1 : index
    %c0_26 = arith.constant 0 : index
    %c0_27 = arith.constant 0 : index
    %41 = vector.load %arg4[%c1_25, %c0_26, %c0_27] : memref<3x128x256xf32, #tpu.memory_space<vmem>>, vector<1x128x256xf32>
    %42 = vector.shape_cast %41 : vector<1x128x256xf32> to vector<128x256xf32>
    %cst_28 = arith.constant dense<0.000000e+00> : vector<16x256xf32>
    %43 = tpu.matmul %40, %42, %cst_28 {dimension_numbers = #tpu.dot_dimension_numbers<[1], [0], [0], [1], [0, 0, 1, 1], [], []>} : vector<16x128xf32>, vector<128x256xf32>, vector<16x256xf32> -> vector<16x256xf32>
    %44 = arith.addf %38, %43 : vector<16x256xf32>
    %45 = vector.extract_strided_slice %31 {offsets = [0, 2, 0], sizes = [1, 16, 128], strides = [1, 1, 1]} : vector<1x18x128xf32> to vector<1x16x128xf32>
    %46 = vector.shape_cast %45 : vector<1x16x128xf32> to vector<16x128xf32>
    %c2_29 = arith.constant 2 : index
    %c0_30 = arith.constant 0 : index
    %c0_31 = arith.constant 0 : index
    %47 = vector.load %arg4[%c2_29, %c0_30, %c0_31] : memref<3x128x256xf32, #tpu.memory_space<vmem>>, vector<1x128x256xf32>
    %48 = vector.shape_cast %47 : vector<1x128x256xf32> to vector<128x256xf32>
    %cst_32 = arith.constant dense<0.000000e+00> : vector<16x256xf32>
    %49 = tpu.matmul %46, %48, %cst_32 {dimension_numbers = #tpu.dot_dimension_numbers<[1], [0], [0], [1], [0, 0, 1, 1], [], []>} : vector<16x128xf32>, vector<128x256xf32>, vector<16x256xf32> -> vector<16x256xf32>
    %50 = arith.addf %44, %49 : vector<16x256xf32>
    %c0_33 = arith.constant 0 : index
    %c0_34 = arith.constant 0 : index
    %51 = vector.load %arg5[%c0_33, %c0_34] : memref<1x256xf32, #tpu.memory_space<vmem>>, vector<1x256xf32>
    %52 = vector.broadcast %51 : vector<1x256xf32> to vector<16x256xf32>
    %53 = arith.addf %50, %52 : vector<16x256xf32>
    %54 = vector.shape_cast %53 : vector<16x256xf32> to vector<1x16x256xf32>
    %c0_35 = arith.constant 0 : index
    %c0_36 = arith.constant 0 : index
    %c0_37 = arith.constant 0 : index
    %55 = vector.load %arg7[%c0_35, %c0_36, %c0_37] : memref<1x16x256xf32, #tpu.memory_space<vmem>>, vector<1x16x256xf32>
    tpu.vector_store %arg7[%c0_35, %c0_36, %c0_37], %54 {strides = array<i32>} : memref<1x16x256xf32, #tpu.memory_space<vmem>>, vector<1x16x256xf32>,
    return
  }
  func.func @transform_0(%arg0: i32) -> (i32, i32, i32) {
    %c0_i32 = arith.constant 0 : i32
    %c0_i32_0 = arith.constant 0 : i32
    %c0_i32_1 = arith.constant 0 : i32
    return %arg0, %c0_i32, %c0_i32_0 : i32, i32, i32
  }
  func.func @transform_1(%arg0: i32) -> (i32, i32, i32) {
    %c0_i32 = arith.constant 0 : i32
    %c0_i32_0 = arith.constant 0 : i32
    %c0_i32_1 = arith.constant 0 : i32
    %c0_i32_2 = arith.constant 0 : i32
    return %c0_i32, %c0_i32_0, %c0_i32_1 : i32, i32, i32
  }
  func.func @transform_2(%arg0: i32) -> (i32, i32) {
    %c0_i32 = arith.constant 0 : i32
    %c0_i32_0 = arith.constant 0 : i32
    %c0_i32_1 = arith.constant 0 : i32
    return %c0_i32, %c0_i32_0 : i32, i32
  }
  func.func @transform_3(%arg0: i32) -> (i32, i32, i32) {
    %c0_i32 = arith.constant 0 : i32
    %c0_i32_0 = arith.constant 0 : i32
    %c0_i32_1 = arith.constant 0 : i32
    %c0_i32_2 = arith.constant 0 : i32
    return %c0_i32, %c0_i32_0, %c0_i32_1 : i32, i32, i32
  }
  func.func @transform_4(%arg0: i32) -> (i32, i32) {
    %c0_i32 = arith.constant 0 : i32
    %c0_i32_0 = arith.constant 0 : i32
    %c0_i32_1 = arith.constant 0 : i32
    return %c0_i32, %c0_i32_0 : i32, i32
  }
  func.func @transform_5(%arg0: i32) -> (i32, i32, i32) {
    %c0_i32 = arith.constant 0 : i32
    %c0_i32_0 = arith.constant 0 : i32
    %c0_i32_1 = arith.constant 0 : i32
    return %arg0, %c0_i32, %c0_i32_0 : i32, i32, i32
  }
  func.func @transform_6(%arg0: i32) -> (i32, i32, i32) {
    %c0_i32 = arith.constant 0 : i32
    %c0_i32_0 = arith.constant 0 : i32
    %c0_i32_1 = arith.constant 0 : i32
    return %arg0, %c0_i32, %c0_i32_0 : i32, i32, i32
  }
}

</mosaic_0001>

<bundles_post_ra>
// kernel: feature_extractor_forward.1
= control target key start
LH: loop header
LB: loop body
LE: loop exit
PB: predicated region body
PF: predicated region fallthrough
CT: control target
= control target key end

     0   :  { %s1438_s21 = smov 0   ;;  %s1873_s0 = inlined_call_operand.vmem [shape: f32[2,16,64], index: 0, kind: input, shape index: {}]   ;;  %s1874_s1 = inlined_call_operand.vmem [shape: f32[3,64,128], index: 1, kind: input, shape index: {}]   ;;  %s1875_s2 = inlined_call_operand.vmem [shape: f32[1,128], index: 2, kind: input, shape index: {}]   ;;  %s1876_s3 = inlined_call_operand.vmem [shape: f32[3,128,256], index: 3, kind: input, shape index: {}]   ;;  %s1877_s4 = inlined_call_operand.vmem [shape: f32[1,256], index: 4, kind: input, shape index: {}]   ;;  %s1878_s5 = inlined_call_operand.vmem [shape: f32[2,16,128], index: 5, kind: output, shape index: {0}]   ;;  %s1879_s6 = inlined_call_operand.vmem [shape: f32[2,16,256], index: 6, kind: output, shape index: {1}]  }
   0x1 LB: > { %s1037_s22 = sadd.s32 4294967295, %s1400_s21   ;;  %p1041_p0 = scmp.ge.s32.totalorder %s1400_s21, 1  ;;  %s1400_s21 = sphi %s1438_s21, %s17_s21  }
   0x2   : > { %p215_p1 = scmp.lt.s32.totalorder %s1400_s21, 3 }
   0x4   : > { %p216_p2 = pnand %p1041_p0, %p215_p1 }
   0x5   : > { %v1048_v0 = vld [vmem:[%s1874_s1 + $0x40] sm:$0xff] (!%p216_p2)  ;;  %v1049_v1 = vld [vmem:[%s1874_s1 + $0x48] sm:$0xff] (!%p216_p2)  ;;  %v1050_v2 = vld [vmem:[%s1874_s1 + $0x50] sm:$0xff] (!%p216_p2)  ;;  %p250_p3 = scmp.lt.s32.totalorder (!%p216_p2), %s1037_s22, 1  ;;  %vm269_vm0 = vcmask (!%p216_p2), 1040384   ;;  %vm296_vm1 = vcmask (!%p216_p2), 1046528  }
   0x6   : > { %219 = sbr.rel (%p216_p2) target bundleno = 529 (0x211), region = 40  ;;  %v1229_v3 = vpack.c.bf16 (!%p216_p2), %v1049_v1, %v1048_v0  ;;  %v1051_v4 = vld [vmem:[%s1874_s1 + $0x58] sm:$0xff] (!%p216_p2)  ;;  %v1052_v6 = vld [vmem:[%s1874_s1 + $0x60] sm:$0xff] (!%p216_p2)  ;;  %v1053_v7 = vld [vmem:[%s1874_s1 + $0x68] sm:$0xff] (!%p216_p2)  ;;  %vm302_vm2 = vcmask (!%p216_p2), 523264   ;;  %vm470_vm3 = vcmask (!%p216_p2), 1045504  }
   0x7   : > { %v1233_v5 = vpack.c.bf16 (!%p216_p2), %v1051_v4, %v1050_v2  ;;  %v1237_v8 = vpack.c.bf16 (!%p216_p2), %v1053_v7, %v1052_v6  ;;  %v1054_v9 = vld [vmem:[%s1874_s1 + $0x70] sm:$0xff] (!%p216_p2)  ;;  %v1055_v10 = vld [vmem:[%s1874_s1 + $0x78] sm:$0xff] (!%p216_p2)  ;;  %v277_v15 = vld [vmem:[%s1874_s1] sm:$0xff] (!%p216_p2) }
   0x8   : > { %1230 = vmatprep.subr.bf16.mxu0 (!%p216_p2), %v1229_v3  ;;  %v581_v16 = vld [vmem:[%s1876_s3 + $0x8] sm:$0xff] (!%p216_p2)  ;;  %v1241_v17 = vpack.c.bf16 (!%p216_p2), %v1055_v10, %v1054_v9  ;;  %v583_v21 = vld [vmem:[%s1876_s3 + $0x18] sm:$0xff] (!%p216_p2)  ;;  %v580_v22 = vld [vmem:[%s1876_s3] sm:$0xff] (!%p216_p2) }
   0x9   : > { %1232 = vmatpush3.bf16.msra.mxu0 (!%p216_p2), %v1229_v3  ;;  %v582_v23 = vld [vmem:[%s1876_s3 + $0x10] sm:$0xff] (!%p216_p2)  ;;  %v278_v26 = vld [vmem:[%s1874_s1 + $0x8] sm:$0xff] (!%p216_p2)  ;;  %v587_v28 = vld [vmem:[%s1876_s3 + $0x38] sm:$0xff] (!%p216_p2)  ;;  %v1309_v29 = vpack.c.bf16 (!%p216_p2), %v583_v21, %v581_v16 }
   0xa   : > { %1234 = vmatprep.subr.bf16.mxu0 (!%p216_p2), %v1233_v5  ;;  %v585_v27 = vld [vmem:[%s1876_s3 + $0x28] sm:$0xff] (!%p216_p2)  ;;  %v1311_v30 = vpack.c.bf16 (!%p216_p2), %v582_v23, %v580_v22  ;;  %v584_v34 = vld [vmem:[%s1876_s3 + $0x20] sm:$0xff] (!%p216_p2)  ;;  %v586_v35 = vld [vmem:[%s1876_s3 + $0x30] sm:$0xff] (!%p216_p2)  ;;  %v1245_v36 = vpack.c.bf16 (!%p216_p2), %v278_v26, %v277_v15 }
   0xb   : > { %v1313_v33 = vpack.c.bf16 (!%p216_p2), %v587_v28, %v585_v27  ;;  %v279_v37 = vld [vmem:[%s1874_s1 + $0x10] sm:$0xff] (!%p216_p2)  ;;  %v280_v38 = vld [vmem:[%s1874_s1 + $0x18] sm:$0xff] (!%p216_p2)  ;;  %1310 = vmatprep.subr.bf16.mxu1 (!%p216_p2), %v1309_v29  ;;  %v589_v39 = vld [vmem:[%s1876_s3 + $0x48] sm:$0xff] (!%p216_p2)  ;;  %v1315_v41 = vpack.c.bf16 (!%p216_p2), %v586_v35, %v584_v34 }
   0xc   : > { %v591_v40 = vld [vmem:[%s1876_s3 + $0x58] sm:$0xff] (!%p216_p2)  ;;  %1312 = vmatpush1.bf16.msra.mxu1 (!%p216_p2), %v1311_v30  ;;  %v588_v43 = vld [vmem:[%s1876_s3 + $0x40] sm:$0xff] (!%p216_p2)  ;;  %v590_v44 = vld [vmem:[%s1876_s3 + $0x50] sm:$0xff] (!%p216_p2)  ;;  %v1249_v45 = vpack.c.bf16 (!%p216_p2), %v280_v38, %v279_v37 }
   0xd   : > { %s1881_s22 = smov (!%p250_p3, %s1037_s22), 1  ;;  %1236 = vmatpush3.bf16.msra.mxu0 %v1233_v5  ;;  %1314 = vmatprep.subr.bf16.mxu1 %v1313_v33  ;;  %v1317_v46 = vpack.c.bf16 %v591_v40, %v589_v39  ;;  %v593_v47 = vld [vmem:[%s1876_s3 + $0x68] sm:$0xff]  ;;  %v595_v48 = vld [vmem:[%s1876_s3 + $0x78] sm:$0xff]  ;;  %v281_v49 = vld [vmem:[%s1874_s1 + $0x20] sm:$0xff]  ;;  %v1319_v51 = vpack.c.bf16 %v590_v44, %v588_v43 }
   0xe   : > { %s1139_s11 = sshll.u32 %s1881_s22, 4  ;;  %1238 = vmatprep.subr.bf16.mxu0 %v1237_v8  ;;  %v282_v50 = vld [vmem:[%s1874_s1 + $0x28] sm:$0xff]  ;;  %v1321_v52 = vpack.c.bf16 %v595_v48, %v593_v47  ;;  %v592_v53 = vld [vmem:[%s1876_s3 + $0x60] sm:$0xff]  ;;  %v594_v54 = vld [vmem:[%s1876_s3 + $0x70] sm:$0xff] }
   0xf   : > { %s254_s16 = scalar_lea.vmem %s1873_s0, %s1139_s11  ;;  %v1253_v55 = vpack.c.bf16 %v282_v50, %v281_v49  ;;  %v597_v56 = vld [vmem:[%s1876_s3 + $0x88] sm:$0xff]  ;;  %v599_v57 = vld [vmem:[%s1876_s3 + $0x98] sm:$0xff]  ;;  %v283_v58 = vld [vmem:[%s1874_s1 + $0x30] sm:$0xff]  ;;  %v1323_v60 = vpack.c.bf16 %v594_v54, %v592_v53  ;;  %s259_s19 = scalar_lea.vmem %s1878_s5, %s1139_s11 }
  0x10   : > { %v265_v11 = vld [vmem:[%s254_s16] sm:$0xff]  ;;  %v266_v12 = vld [vmem:[%s254_s16 + $0x8] sm:$0xff]  ;;  %1316 = vmatpush1.bf16.msra.mxu1 %v1315_v41  ;;  %v284_v59 = vld [vmem:[%s1874_s1 + $0x38] sm:$0xff]  ;;  %v1325_v61 = vpack.c.bf16 %v599_v57, %v597_v56  ;;  %s1141_s16 = sshll.u32 %s1881_s22, 5 }
  0x11   : > { %v270_v13 = vrot.slane %v265_v11, 7  ;;  %v271_v14 = vrot.slane %v266_v12, 7  ;;  %1240 = vmatpush3.bf16.msra.mxu0 %v1237_v8  ;;  %1318 = vmatprep.subr.bf16.mxu1 %v1317_v46  ;;  %v596_v62 = vld [vmem:[%s1876_s3 + $0x80] sm:$0xff]  ;;  %v598_v63 = vld [vmem:[%s1876_s3 + $0x90] sm:$0xff]  ;;  %v1257_v0 = vpack.c.bf16 %v284_v59, %v283_v58  ;;  %v601_v1 = vld [vmem:[%s1876_s3 + $0xa8] sm:$0xff] }
  0x12   : > { %1242 = vmatprep.subr.bf16.mxu0 %v1241_v17  ;;  %v603_v2 = vld [vmem:[%s1876_s3 + $0xb8] sm:$0xff]  ;;  %v1060_v3 = vld [vmem:[%s1874_s1 + $0x80] sm:$0xff]  ;;  %v1061_v4 = vld [vmem:[%s1874_s1 + $0x88] sm:$0xff]  ;;  %v1327_v5 = vpack.c.bf16 %v598_v63, %v596_v62 }
  0x13   : > { %v1485_v18 = vsel %vm269_vm0, %v270_v13, %v271_v14  ;;  %v1488_v19 = vsel %vm269_vm0, 0.0, %v270_v13  ;;  %v1491_v20 = vsel %vm269_vm0, %v271_v14, 0.0  ;;  %v1329_v6 = vpack.c.bf16 %v603_v2, %v601_v1  ;;  %v600_v7 = vld [vmem:[%s1876_s3 + $0xa0] sm:$0xff]  ;;  %v602_v8 = vld [vmem:[%s1876_s3 + $0xb0] sm:$0xff]  ;;  %v1063_v13 = vld [vmem:[%s1874_s1 + $0x98] sm:$0xff] }
  0x14   : > { %v297_v24 = vrot.slane %v1488_v19, 1  ;;  %v298_v25 = vrot.slane %v1485_v18, 1  ;;  %v300_v32 = vrot.slane %v1491_v20, 1  ;;  %1320 = vmatpush1.bf16.msra.mxu1 %v1319_v51  ;;  %v1261_v9 = vpack.c.bf16 %v1061_v4, %v1060_v3  ;;  %v1062_v10 = vld [vmem:[%s1874_s1 + $0x90] sm:$0xff]  ;;  %v605_v14 = vld [vmem:[%s1876_s3 + $0xc8] sm:$0xff]  ;;  %v607_v15 = vld [vmem:[%s1876_s3 + $0xd8] sm:$0xff] }
  0x15   : > { %1244 = vmatpush3.bf16.msra.mxu0 %v1241_v17  ;;  %1322 = vmatprep.subr.bf16.mxu1 %v1321_v52  ;;  %v471_v11 = vrot.slane %v1488_v19, 2  ;;  %v472_v12 = vrot.slane %v1485_v18, 2  ;;  %v1331_v16 = vpack.c.bf16 %v602_v8, %v600_v7  ;;  %v1265_v17 = vpack.c.bf16 %v1063_v13, %v1062_v10  ;;  %v1064_v22 = vld [vmem:[%s1874_s1 + $0xa0] sm:$0xff]  ;;  %v1065_v23 = vld [vmem:[%s1874_s1 + $0xa8] sm:$0xff]  ;;  %v1067_v26 = vld [vmem:[%s1874_s1 + $0xb8] sm:$0xff] }
  0x16   : > { %v299_v31 = vsel %vm296_vm1, %v297_v24, %v298_v25  ;;  %v301_v42 = vsel %vm296_vm1, %v298_v25, %v300_v32  ;;  %1246 = vmatprep.subr.bf16.mxu0 %v1245_v36  ;;  %v1333_v21 = vpack.c.bf16 %v607_v15, %v605_v14  ;;  %v1269_v24 = vpack.c.bf16 %v1065_v23, %v1064_v22  ;;  %v1066_v25 = vld [vmem:[%s1874_s1 + $0xb0] sm:$0xff]  ;;  %v1074_v28 = vld [vmem:[%s1876_s3 + $0x118] sm:$0xff]  ;;  %v1076_v33 = vld [vmem:[%s1876_s3 + $0x128] sm:$0xff] }
  0x17   : > { %1188 = vmatprep.mubr.msk.f32.mxu0 %vm302_vm2, %v299_v31  ;;  %v1273_v27 = vpack.c.bf16 %v1067_v26, %v1066_v25  ;;  %v474_v29 = vrot.slane %v1491_v20, 2  ;;  %v1071_v31 = vld [vmem:[%s1876_s3 + $0x100] sm:$0xff]  ;;  %v1073_v32 = vld [vmem:[%s1876_s3 + $0x110] sm:$0xff]  ;;  %v1078_v34 = vld [vmem:[%s1876_s3 + $0x138] sm:$0xff]  ;;  %v1402_v23 = vmov 0.0  }
  0x18   : > { %1189 = vmatmul.mubr.msk.f32.vlgmr.msra.gmra.mrb[0].mxu0 %vm302_vm2, %v301_v42  ;;  %1324 = vmatpush1.bf16.msra.mxu1 %v1323_v60  ;;  %v1279_v35 = vpack.c.bf16 %v1073_v32, %v1071_v31  ;;  %v1075_v37 = vld [vmem:[%s1876_s3 + $0x120] sm:$0xff]  ;;  %v1077_v38 = vld [vmem:[%s1876_s3 + $0x130] sm:$0xff]  ;;  %v1080_v39 = vld [vmem:[%s1876_s3 + $0x148] sm:$0xff] }
  0x19   : > { %1248 = vmatpush3.bf16.msra.mxu0 %v1245_v36  ;;  %1207 = vmatprep.mubr.msk.f32.mxu0 %vm302_vm2, %v1488_v19  ;;  %v473_v19 = vsel %vm470_vm3, %v471_v11, %v472_v12  ;;  %v475_v20 = vsel %vm470_vm3, %v472_v12, %v474_v29  ;;  %v1281_v36 = vpack.c.bf16 %v1078_v34, %v1076_v33  ;;  %v1082_v40 = vld [vmem:[%s1876_s3 + $0x158] sm:$0xff]  ;;  %v1079_v43 = vld [vmem:[%s1876_s3 + $0x140] sm:$0xff]  ;;  %v1081_v44 = vld [vmem:[%s1876_s3 + $0x150] sm:$0xff] }
  0x1a   : > { %1250 = vmatprep.subr.bf16.mxu0 %v1249_v45  ;;  %1326 = vmatprep.subr.bf16.mxu1 %v1325_v61  ;;  %v1283_v41 = vpack.c.bf16 %v1077_v38, %v1075_v37  ;;  %v1285_v42 = vpack.c.bf16 %v1082_v40, %v1080_v39  ;;  %v1086_v46 = vld [vmem:[%s1876_s3 + $0x178] sm:$0xff]  ;;  %v1287_v47 = vpack.c.bf16 %v1081_v44, %v1079_v43  ;;  %v1083_v49 = vld [vmem:[%s1876_s3 + $0x160] sm:$0xff]  ;;  %v1085_v50 = vld [vmem:[%s1876_s3 + $0x170] sm:$0xff] }
  0x1b   : > { %v1088_v51 = vld [vmem:[%s1876_s3 + $0x188] sm:$0xff]  ;;  %v1090_v52 = vld [vmem:[%s1876_s3 + $0x198] sm:$0xff]  ;;  %v1291_v53 = vpack.c.bf16 %v1085_v50, %v1083_v49  ;;  %v1089_v56 = vld [vmem:[%s1876_s3 + $0x190] sm:$0xff]  ;;  %795 = vmatprep.mubr.f32.mxu1 %v1402_v23 }
  0x1c   : > { %1328 = vmatpush1.bf16.msra.mxu1 %v1327_v5  ;;  %v1293_v54 = vpack.c.bf16 %v1090_v52, %v1088_v51  ;;  %v1092_v58 = vld [vmem:[%s1876_s3 + $0x1a8] sm:$0xff]  ;;  %v1094_v59 = vld [vmem:[%s1876_s3 + $0x1b8] sm:$0xff]  ;;  %v604_v60 = vld [vmem:[%s1876_s3 + $0xc0] sm:$0xff] }
  0x1d   : > { %1252 = vmatpush3.bf16.msra.mxu0 %v1249_v45  ;;  %1330 = vmatprep.subr.bf16.mxu1 %v1329_v6  ;;  %v1084_v45 = vld [vmem:[%s1876_s3 + $0x168] sm:$0xff]  ;;  %v1297_v61 = vpack.c.bf16 %v1094_v59, %v1092_v58  ;;  %v606_v62 = vld [vmem:[%s1876_s3 + $0xd0] sm:$0xff]  ;;  %v1091_v63 = vld [vmem:[%s1876_s3 + $0x1a0] sm:$0xff] }
  0x1e   : > { %1254 = vmatprep.subr.bf16.mxu0 %v1253_v55  ;;  %v1289_v48 = vpack.c.bf16 %v1086_v46, %v1084_v45  ;;  %v1335_v1 = vpack.c.bf16 %v606_v62, %v604_v60  ;;  %v609_v3 = vld [vmem:[%s1876_s3 + $0xe8] sm:$0xff]  ;;  %v611_v4 = vld [vmem:[%s1876_s3 + $0xf8] sm:$0xff]  ;;  %v608_v8 = vld [vmem:[%s1876_s3 + $0xe0] sm:$0xff] }
  0x1f   : > { %v1337_v5 = vpack.c.bf16 %v611_v4, %v609_v3  ;;  %v1096_v6 = vld [vmem:[%s1876_s3 + $0x1c8] sm:$0xff]  ;;  %v1098_v7 = vld [vmem:[%s1876_s3 + $0x1d8] sm:$0xff]  ;;  %v610_v10 = vld [vmem:[%s1876_s3 + $0xf0] sm:$0xff] }
  0x20   : > { %1332 = vmatpush1.bf16.msra.mxu1 %v1331_v16  ;;  %v1095_v11 = vld [vmem:[%s1876_s3 + $0x1c0] sm:$0xff]  ;;  %v1097_v12 = vld [vmem:[%s1876_s3 + $0x1d0] sm:$0xff]  ;;  %v1339_v13 = vpack.c.bf16 %v610_v10, %v608_v8  ;;  %v1106_v15 = vld [vmem:[%s1876_s3 + $0x208] sm:$0xff] }
  0x21   : > { %1256 = vmatpush3.bf16.msra.mxu0 %v1253_v55  ;;  %1334 = vmatprep.subr.bf16.mxu1 %v1333_v21  ;;  %v1087_v55 = vld [vmem:[%s1876_s3 + $0x180] sm:$0xff]  ;;  %v1303_v14 = vpack.c.bf16 %v1097_v12, %v1095_v11  ;;  %v1108_v16 = vld [vmem:[%s1876_s3 + $0x218] sm:$0xff]  ;;  %v1101_v25 = vld [vmem:[%s1876_s3 + $0x1f0] sm:$0xff] }
  0x22   : > { %1258 = vmatprep.subr.bf16.mxu0 %v1257_v0  ;;  %v1295_v57 = vpack.c.bf16 %v1089_v56, %v1087_v55  ;;  %v1102_v21 = vld [vmem:[%s1876_s3 + $0x1f8] sm:$0xff]  ;;  %v1105_v31 = vld [vmem:[%s1876_s3 + $0x200] sm:$0xff]  ;;  %v1107_v32 = vld [vmem:[%s1876_s3 + $0x210] sm:$0xff] }
  0x23   : > { %v1110_v34 = vld [vmem:[%s1876_s3 + $0x228] sm:$0xff]  ;;  %v1111_v37 = vld [vmem:[%s1876_s3 + $0x230] sm:$0xff]  ;;  %vm1103_vm4 = vmneg %vm269_vm0  ;;  %v1343_v39 = vpack.c.bf16 %v1107_v32, %v1105_v31 }
  0x24   : > { %1336 = vmatpush1.bf16.msra.mxu1 %v1335_v1  ;;  %v1114_v44 = vld [vmem:[%s1876_s3 + $0x248] sm:$0xff]  ;;  %v1116_v45 = vld [vmem:[%s1876_s3 + $0x258] sm:$0xff]  ;;  %v1113_v55 = vld [vmem:[%s1876_s3 + $0x240] sm:$0xff] }
  0x25   : > { %1260 = vmatpush3.bf16.msra.mxu0 %v1257_v0  ;;  %v1093_v0 = vld [vmem:[%s1876_s3 + $0x1b0] sm:$0xff]  ;;  %1338 = vmatprep.subr.bf16.mxu1 %v1337_v5  ;;  %v1118_v59 = vld [vmem:[%s1876_s3 + $0x268] sm:$0xff]  ;;  %v1120_v60 = vld [vmem:[%s1876_s3 + $0x278] sm:$0xff] }
  0x26   : > { %1262 = vmatprep.subr.bf16.mxu0 %v1261_v9  ;;  %v1299_v2 = vpack.c.bf16 %v1093_v0, %v1091_v63  ;;  %v1115_v56 = vld [vmem:[%s1876_s3 + $0x250] sm:$0xff]  ;;  %v1353_v0 = vpack.c.bf16 %v1120_v60, %v1118_v59  ;;  %v1117_v1 = vld [vmem:[%s1876_s3 + $0x260] sm:$0xff]  ;;  %v1122_v3 = vld [vmem:[%s1876_s3 + $0x288] sm:$0xff] }
  0x27   : > { %v1351_v63 = vpack.c.bf16 %v1115_v56, %v1113_v55  ;;  %v1124_v4 = vld [vmem:[%s1876_s3 + $0x298] sm:$0xff]  ;;  %v1123_v8 = vld [vmem:[%s1876_s3 + $0x290] sm:$0xff] }
  0x28   : > { %1208 = vmatmul.mubr.msk.f32.vlgmr.msra.gmra.mrb[0].mxu0 %vm302_vm2, %v1485_v18  ;;  %v1072_v18 = vld [vmem:[%s1876_s3 + $0x108] sm:$0xff]  ;;  %1340 = vmatpush1.bf16.msra.mxu1 %v1339_v13  ;;  %v1128_v10 = vld [vmem:[%s1876_s3 + $0x2b8] sm:$0xff]  ;;  %v1125_v13 = vld [vmem:[%s1876_s3 + $0x2a0] sm:$0xff] }
  0x29   : > { %1264 = vmatpush3.bf16.msra.mxu0 %v1261_v9  ;;  %1226 = vmatprep.mubr.msk.f32.mxu0 %vm302_vm2, %v473_v19  ;;  %v1277_v30 = vpack.c.bf16 %v1074_v28, %v1072_v18  ;;  %v1301_v9 = vpack.c.bf16 %v1098_v7, %v1096_v6  ;;  %v1100_v19 = vld [vmem:[%s1876_s3 + $0x1e8] sm:$0xff]  ;;  %v1357_v6 = vpack.c.bf16 %v1124_v4, %v1122_v3  ;;  %v1121_v7 = vld [vmem:[%s1876_s3 + $0x280] sm:$0xff] }
  0x2a   : > { %1266 = vmatprep.subr.bf16.mxu0 %v1265_v17  ;;  %v1305_v22 = vpack.c.bf16 %v1102_v21, %v1100_v19  ;;  %v1359_v11 = vpack.c.bf16 %v1123_v8, %v1121_v7  ;;  %v1129_v21 = vld [vmem:[%s1876_s3 + $0x2c0] sm:$0xff] }
  0x2d   : > { %1268 = vmatpush3.bf16.msra.mxu0 %v1265_v17  ;;  %v1341_v17 = vpack.c.bf16 %v1108_v16, %v1106_v15  ;;  %v1130_v15 = vld [vmem:[%s1876_s3 + $0x2c8] sm:$0xff]  ;;  %v1132_v16 = vld [vmem:[%s1876_s3 + $0x2d8] sm:$0xff] }
  0x2e   : > { %1270 = vmatprep.subr.bf16.mxu0 %v1269_v24  ;;  %v1365_v19 = vpack.c.bf16 %v1132_v16, %v1130_v15 }
  0x2f   : > { %1342 = vmatprep.subr.bf16.mxu1 %v1341_v17 }
  0x31   : > { %1272 = vmatpush3.bf16.msra.mxu0 %v1269_v24  ;;  %v1099_v24 = vld [vmem:[%s1876_s3 + $0x1e0] sm:$0xff] }
  0x32   : > { %1274 = vmatprep.subr.bf16.mxu0 %v1273_v27  ;;  %v1307_v26 = vpack.c.bf16 %v1101_v25, %v1099_v24  ;;  %v1134_v24 = vld [vmem:[%s1876_s3 + $0x2e8] sm:$0xff]  ;;  %v1136_v25 = vld [vmem:[%s1876_s3 + $0x2f8] sm:$0xff] }
  0x35   : > { %1276 = vmatpush3.bf16.msra.mxu0 %v1273_v27  ;;  %v1070_v27 = vld [vmem:[%s1875_s2] ss:$0 sm:$0xff] }
  0x36   : > { %1278 = vmatprep.subr.bf16.mxu0 %v1277_v30 }
  0x38   : > { %1227 = vmatmul.mubr.msk.f32.vlgmr.msra.gmra.mrb[0].mxu0 %vm302_vm2, %v475_v20  ;;  %v1112_v20 = vld [vmem:[%s1876_s3 + $0x238] sm:$0xff] }
  0x39   : > { %1280 = vmatpush1.bf16.msra.mxu0 %v1279_v35  ;;  %718 = vmatprep.mubr.f32.mxu0 %v1402_v23 }
  0x3a   : > { %1282 = vmatprep.subr.bf16.mxu0 %v1281_v36  ;;  %v1109_v36 = vld [vmem:[%s1876_s3 + $0x220] sm:$0xff] }
  0x3b   : > { %v1347_v43 = vpack.c.bf16 %v1111_v37, %v1109_v36  ;;  %v929_v36 = vld [vmem:[%s1877_s4] sm:$0x3] }
  0x3d   : > { %1284 = vmatpush1.bf16.msra.mxu0 %v1283_v41  ;;  %v1345_v41 = vpack.c.bf16 %v1112_v20, %v1110_v34  ;;  %v931_v34 = vlaneseq }
  0x3e   : > { %1286 = vmatprep.subr.bf16.mxu0 %v1285_v42 }
  0x3f   : > { %v932_v20 = vshrl.u32 %v931_v34, 7 }
  0x41   : > { %1288 = vmatpush1.bf16.msra.mxu0 %v1287_v47  ;;  %v937_v37 = vsub.s32 1, %v932_v20 }
  0x42   : > { %1290 = vmatprep.subr.bf16.mxu0 %v1289_v48 }
  0x45   : > { %1292 = vmatpush1.bf16.msra.mxu0 %v1291_v53 }
  0x46   : > { %1294 = vmatprep.subr.bf16.mxu0 %v1293_v54  ;;  %v1349_v54 = vpack.c.bf16 %v1116_v45, %v1114_v44 }
  0x49   : > { %1296 = vmatpush1.bf16.msra.mxu0 %v1295_v57 }
  0x4a   : > { %1298 = vmatprep.subr.bf16.mxu0 %v1297_v61 }
  0x4d   : > { %1300 = vmatpush1.bf16.msra.mxu0 %v1299_v2  ;;  %v1119_v2 = vld [vmem:[%s1876_s3 + $0x270] sm:$0xff] }
  0x4e   : > { %1302 = vmatprep.subr.bf16.mxu0 %v1301_v9  ;;  %v1355_v5 = vpack.c.bf16 %v1119_v2, %v1117_v1  ;;  %v1126_v9 = vld [vmem:[%s1876_s3 + $0x2a8] sm:$0xff] }
  0x4f   : > { %v1361_v12 = vpack.c.bf16 %v1128_v10, %v1126_v9 }
  0x51   : > { %1304 = vmatpush1.bf16.msra.mxu0 %v1303_v14  ;;  %v1127_v14 = vld [vmem:[%s1876_s3 + $0x2b0] sm:$0xff] }
  0x52   : > { %1306 = vmatprep.subr.bf16.mxu0 %v1305_v22  ;;  %v1363_v17 = vpack.c.bf16 %v1127_v14, %v1125_v13  ;;  %v1131_v22 = vld [vmem:[%s1876_s3 + $0x2d0] sm:$0xff] }
  0x55   : > { %1308 = vmatpush1.bf16.msra.mxu0 %v1307_v26  ;;  %v1367_v26 = vpack.c.bf16 %v1131_v22, %v1129_v21 }
 0x10b   : > { %v1228_v18 = vpop.f32.mrb[0].mxu0 }
 0x10c   : > { %v565_v28 = vadd.f32 %v1228_v18, %v1070_v27  ;;  %v546_v29 = vpop.f32.mrb[1].mxu0  ;;  %v1133_v18 = vld [vmem:[%s1876_s3 + $0x2e0] sm:$0xff] }
 0x10d   : > { %v564_v30 = vadd.f32 %v1070_v27, %v546_v29  ;;  %v1369_v27 = vpack.c.bf16 %v1136_v25, %v1134_v24 }
 0x10e   : > { %567 = vst [vmem:[%s259_s19 + $0x8] sm:$0xff] %v565_v28  ;;  %v569_v33 = vmax.f32 %v565_v28, 0.0  ;;  %v1135_v28 = vld [vmem:[%s1876_s3 + $0x2f0] sm:$0xff] }
 0x10f   : > { %566 = vst [vmem:[%s259_s19] sm:$0xff] %v564_v30  ;;  %v568_v35 = vmax.f32 %v564_v30, 0.0  ;;  %v1371_v29 = vpack.c.bf16 %v1135_v28, %v1133_v18  ;;  %s264_s19 = scalar_lea.vmem %s1879_s6, %s1141_s16 }
 0x110   : > { %v573_v38 = vrot.slane %v569_v33, 7 }
 0x111   : > { %v572_v40 = vrot.slane %v568_v35, 7  ;;  %v933_v35 = vsub.s32 0, %v932_v20 }
 0x112   : > { %v579_v42 = vsel %vm269_vm0, %v573_v38, 0.0 }
 0x113   : > { %v650_v46 = vrot.slane %v579_v42, 1  ;;  %v844_v47 = vrot.slane %v579_v42, 2  ;;  %v574_v48 = vsel %vm269_vm0, %v572_v40, %v573_v38  ;;  %v578_v49 = vsel %vm269_vm0, 0.0, %v572_v40  ;;  %1104 = vmatmul.mubr.msk.f32.vlgmr.msra.gmra.mrb[0].mxu1 %vm1103_vm4, %v572_v40 }
 0x114   : > { %v841_v50 = vrot.slane %v578_v49, 2  ;;  %v842_v51 = vrot.slane %v574_v48, 2  ;;  %1344 = vmatpush1.bf16.msra.mxu1 %v1343_v39  ;;  %801 = vmatprep.mubr.f32.mxu1 %v1402_v23  ;;  %v647_v52 = vrot.slane %v578_v49, 1  ;;  %v648_v53 = vrot.slane %v574_v48, 1 }
 0x115   : > { %1346 = vmatprep.subr.bf16.mxu1 %v1345_v41  ;;  %v934_v38 = vrot.slane %v929_v36, %v933_v35  ;;  %v938_v40 = vrot.slane %v929_v36, %v937_v37 }
 0x116   : > { %v649_v57 = vsel %vm296_vm1, %v647_v52, %v648_v53  ;;  %v651_v58 = vsel %vm296_vm1, %v648_v53, %v650_v46  ;;  %v843_v61 = vsel %vm470_vm3, %v841_v50, %v842_v51  ;;  %v845_v62 = vsel %vm470_vm3, %v842_v51, %v844_v47 }
 0x117   : > { %719 = vmatmul.mubr.f32.vlgmr.msra.gmra.mrb[2].mxu0 %v649_v57  ;;  %802 = vmatmul.mubr.f32.gmra.mrb[2].mxu1 %v574_v48 }
 0x118   : > { %1348 = vmatpush1.bf16.msra.mxu1 %v1347_v43  ;;  %724 = vmatprep.mubr.f32.mxu0 %v1402_v23 }
 0x119   : > { %1350 = vmatprep.subr.bf16.mxu1 %v1349_v54  ;;  %912 = vmatprep.mubr.f32.mxu1 %v1402_v23 }
 0x11b   : > { %725 = vmatmul.mubr.f32.gmra.mrb[4].mxu0 %v651_v58 }
 0x11c   : > { %1352 = vmatpush1.bf16.msra.mxu1 %v1351_v63 }
 0x11d   : > { %1354 = vmatprep.subr.bf16.mxu1 %v1353_v0 }
 0x120   : > { %1356 = vmatpush1.bf16.msra.mxu1 %v1355_v5 }
 0x121   : > { %1358 = vmatprep.subr.bf16.mxu1 %v1357_v6 }
 0x124   : > { %1360 = vmatpush1.bf16.msra.mxu1 %v1359_v11 }
 0x125   : > { %1362 = vmatprep.subr.bf16.mxu1 %v1361_v12 }
 0x128   : > { %1364 = vmatpush1.bf16.msra.mxu1 %v1363_v17 }
 0x129   : > { %1366 = vmatprep.subr.bf16.mxu1 %v1365_v19 }
 0x12c   : > { %1368 = vmatpush1.bf16.msra.mxu1 %v1367_v26 }
 0x12d   : > { %1370 = vmatprep.subr.bf16.mxu1 %v1369_v27 }
 0x130   : > { %1372 = vmatpush1.bf16.msra.mxu1 %v1371_v29 }
 0x133   : > { %913 = vmatmul.mubr.f32.vlgmr.msra.gmra.mrb[0].mxu1 %v843_v61 }
 0x134   : > { %918 = vmatprep.mubr.f32.mxu1 %v1402_v23 }
 0x137   : > { %919 = vmatmul.mubr.f32.gmra.mrb[2].mxu1 %v845_v62 }
 0x1ea   : > { %v720_v30 = vpop.f32.mrb[2].mxu0 }
 0x1eb   : > { %v722_v31 = vpop.f32.mrb[3].mxu0 }
 0x1ee   : > { %v726_v32 = vpop.f32.mrb[4].mxu0 }
 0x1ef   : > { %v728_v33 = vpop.f32.mrb[5].mxu0 }
 0x206   : > { %v914_v39 = vpop.f32.mrb[0].mxu1 }
 0x207   : > { %v1373_v41 = vadd.f32 %v914_v39, %v720_v30  ;;  %v916_v42 = vpop.f32.mrb[1].mxu1 }
 0x208   : > { %v1374_v23 = vadd.f32 %v916_v42, %v722_v31 }
 0x209   : > { %v941_v43 = vadd.f32 %v1373_v41, %v934_v38 }
 0x20a   : > { %v942_v44 = vadd.f32 %v1374_v23, %v938_v40  ;;  %v920_v45 = vpop.f32.mrb[2].mxu1 }
 0x20b   : > { %945 = vst [vmem:[%s264_s19] sm:$0xff] %v941_v43  ;;  %v1375_v46 = vadd.f32 %v920_v45, %v726_v32  ;;  %v922_v47 = vpop.f32.mrb[3].mxu1 }
 0x20c   : > { %946 = vst [vmem:[%s264_s19 + $0x8] sm:$0xff] %v942_v44  ;;  %v1376_v48 = vadd.f32 %v922_v47, %v728_v33 }
 0x20d   : > { %v943_v49 = vadd.f32 %v1375_v46, %v934_v38 }
 0x20e   : > { %v944_v50 = vadd.f32 %v1376_v48, %v938_v40 }
 0x20f   : > { %947 = vst [vmem:[%s264_s19 + $0x10] sm:$0xff] %v943_v49 }
 0x210   : > { %948 = vst [vmem:[%s264_s19 + $0x18] sm:$0xff] %v944_v50 }
 0x211 PF: > { %s17_s21 = sadd.s32 1, %s1400_s21  }
 0x212   : > { %p14_p4 = scmp.ge.s32.totalorder %s17_s21, 4  }
 0x214   :  { %16 = sbr.rel (!%p14_p4) target bundleno = 1 (0x1), region = 86 }

</bundles_post_ra>
